<compile_context>
chip_gen: v7x
topology: tpu7x:2x2x1
jax: 0.10.0
libtpu: 0.0.40
codegen_flags: <defaults>
</compile_context>

<pallas_src>
import functools

import jax
import jax.numpy as jnp
from jax import lax
from jax.experimental import pallas as pl
from jax.experimental.pallas import tpu as pltpu


_HEAD_IDX = {"spinal": 0, "neural": 1, "subart": 2}
_N_LOGITS = 30           # per-head logits
_N_BB = 2                # bb_head outputs
_OUT_PAD = 128           # lane-dense combined output width (30 logits + 2 bb + zeros)
_ROW_TILE_TARGET = 512   # spatial rows per grid step (multiple of 8)


# ------------------------------- utilities --------------------------------

def _round_up(x, m):
    return ((x + m - 1) // m) * m


def _row_tiling(hw, target=_ROW_TILE_TARGET):
    """Return (TILE_R, HW_pad).  TILE_R is a multiple of 8; a single grid step
    is used whenever the whole (padded) spatial extent fits the target."""
    hw8 = _round_up(hw, 8)
    if hw8 <= target:
        return hw8, hw8
    return target, _round_up(hw, target)


def _vmem_limit_bytes(footprint):
    """VMEM limit derived from the actual footprint, capped per generation
    (v7x has 64 MiB physical per-TC vs 128 MiB on v5e/v6e)."""
    try:
        cap = int(pltpu.get_tpu_info().vmem_capacity_bytes)
    except Exception:
        cap = 64 * 1024 * 1024        # conservative default: v7x per-TC VMEM
    limit = max(4 * footprint, 16 * 1024 * 1024)
    return int(min(limit, (3 * cap) // 4))


# ----------------------------- Pallas kernel ------------------------------

def _fused_kernel(head_idx_ref,      # SMEM (B,) int32   (scalar prefetch)
                  p_ref,             # (1, TILE_R, K_pad)      bf16 im2col patches
                  wc_ref,            # (K_pad, Cout_pad)       bf16 conv weight (resident)
                  bc_ref,            # (1, Cout_pad)           f32  conv bias   (resident)
                  wh_ref,            # (3, Cout_pad, OUT_PAD)  f32  all heads   (resident)
                  bh_ref,            # (3, 1, OUT_PAD)         f32  head bias + bb bias folded
                  wbb_ref,           # (2, HW_pad, Cout_pad)   bf16 bb weight   (resident)
                  out_ref,           # (1, 1, OUT_PAD)         f32  combined output
                  *scratch,          # () if single_step else (pooled_acc, bb0_acc, bb1_acc)
                  hw, tile_r, inv_hw, need_mask, single_step):
    b = pl.program_id(0)
    j = pl.program_id(1)

    # Encoder conv tile: (TILE_R, K_pad) @ (K_pad, Cout_pad) on the MXU
    # (bf16 inputs, f32 accumulation); bias + ReLU epilogue in f32.
    feats = jnp.dot(p_ref[0], wc_ref[...], preferred_element_type=jnp.float32)
    feats = jnp.maximum(feats + bc_ref[...], 0.0)            # (TILE_R, Cout_pad) f32

    if need_mask:
        # Zero rows past the true spatial extent: zero-padded patch rows would
        # otherwise contribute ReLU(b_conv) to the pool / bb sums.
        row = j * tile_r + lax.broadcasted_iota(jnp.int32, (tile_r, 1), 0)
        feats = jnp.where(row < hw, feats, 0.0)

    # bb_head partials against the *resident* bf16 weight slab, sliced per tile.
    # Unrolled over the 2 outputs (no (2,TILE_R,C) f32 temporary); f32 multiply
    # + accumulate so the same code lowers on v5e (no bf16 VPU).
    row0 = pl.multiple_of(j * tile_r, 8)
    w0 = wbb_ref[0, pl.ds(row0, tile_r), :].astype(jnp.float32)
    w1 = wbb_ref[1, pl.ds(row0, tile_r), :].astype(jnp.float32)
    bb0_part = jnp.sum(feats * w0, axis=0, keepdims=True)     # (1, Cout_pad)
    bb1_part = jnp.sum(feats * w1, axis=0, keepdims=True)     # (1, Cout_pad)
    pool_part = jnp.sum(feats, axis=0, keepdims=True)         # (1, Cout_pad)

    def epilogue(pooled, bb0_vec, bb1_vec):
        hid = head_idx_ref[b]
        head_vec = jnp.dot(pooled, wh_ref[hid],
                           preferred_element_type=jnp.float32) + bh_ref[hid]  # (1, OUT_PAD)
        bb0 = jnp.sum(bb0_vec)
        bb1 = jnp.sum(bb1_vec)
        lane = lax.broadcasted_iota(jnp.int32, head_vec.shape, 1)
        # bb bias already folded into bh_ref lanes 30/31; add the data terms.
        out_ref[0] = head_vec + jnp.where(
            lane == _N_LOGITS, bb0,
            jnp.where(lane == _N_LOGITS + 1, bb1, 0.0))

    if single_step:
        # Demo-scale path: whole spatial extent in one step -> no accumulators,
        # no init/finalize branches.
        epilogue(pool_part * inv_hw, bb0_part, bb1_part)
    else:
        pooled_acc, bb0_acc, bb1_acc = scratch

        @pl.when(j == 0)
        def _():
            pooled_acc[...] = jnp.zeros_like(pooled_acc)
            bb0_acc[...] = jnp.zeros_like(bb0_acc)
            bb1_acc[...] = jnp.zeros_like(bb1_acc)

        pooled_acc[...] += pool_part
        bb0_acc[...] += bb0_part
        bb1_acc[...] += bb1_part

        @pl.when(j == pl.num_programs(1) - 1)
        def _():
            epilogue(pooled_acc[...] * inv_hw, bb0_acc[...], bb1_acc[...])


# ------------------------------ host helpers ------------------------------

def _im2col(x_nchw, kh, kw, stride, pad):
    """NCHW input -> (B, Ho*Wo, kh*kw*Cin) patches ((kh,kw,Cin) fastest-last)."""
    B, Cin, H, W = x_nchw.shape
    Ho = (H + 2 * pad - kh) // stride + 1
    Wo = (W + 2 * pad - kw) // stride + 1
    x_nhwc = jnp.transpose(x_nchw, (0, 2, 3, 1))
    xp = jnp.pad(x_nhwc, ((0, 0), (pad, pad), (pad, pad), (0, 0)))
    cols = []
    for i in range(kh):
        for j in range(kw):
            cols.append(xp[:, i:i + stride * Ho:stride, j:j + stride * Wo:stride, :])
    patches = jnp.concatenate(cols, axis=-1)                  # (B, Ho, Wo, kh*kw*Cin)
    return patches.reshape(B, Ho * Wo, kh * kw * Cin), Ho, Wo


def _im2col_padded(x_nchw, hw_pad, k_pad):
    patches, Ho, Wo = _im2col(x_nchw, 3, 3, 2, 1)             # (B, HW, K)
    B, HW, K = patches.shape
    patches = jnp.pad(patches, ((0, 0), (0, hw_pad - HW), (0, k_pad - K)))
    return patches.astype(jnp.bfloat16)


def prepare_params(w_conv, b_conv, w_heads, b_heads, w_bb, b_bb, Ho, Wo):
    """One-time conversion of PyTorch-layout params into padded kernel layouts."""
    Cout, Cin, kh, kw = w_conv.shape
    K = kh * kw * Cin
    HW = Ho * Wo
    K_pad = _round_up(K, 128)
    Cout_pad = _round_up(Cout, 128)
    _, HW_pad = _row_tiling(HW)
    n_heads = w_heads.shape[0]
    assert _N_LOGITS + _N_BB <= _OUT_PAD

    # conv weight: (Cout, Cin, kh, kw) -> (kh,kw,Cin,Cout) -> (K, Cout) -> zero-pad -> bf16.
    w_conv_mat = jnp.transpose(w_conv, (2, 3, 1, 0)).reshape(K, Cout).astype(jnp.float32)
    w_conv_mat = jnp.pad(w_conv_mat, ((0, K_pad - K), (0, Cout_pad - Cout))).astype(jnp.bfloat16)
    b_conv_pad = jnp.pad(b_conv.astype(jnp.float32), (0, Cout_pad - Cout)).reshape(1, Cout_pad)

    # all 3 heads resident: pad input-channel rows and output lanes with zeros.
    w_heads_pad = jnp.pad(w_heads.astype(jnp.float32),
                          ((0, 0), (0, Cout_pad - Cout), (0, _OUT_PAD - _N_LOGITS)))
    # combined bias: lanes [0:30] head bias, lanes 30/31 carry the bb bias.
    b_comb = jnp.zeros((n_heads, 1, _OUT_PAD), jnp.float32)
    b_comb = b_comb.at[:, 0, :_N_LOGITS].set(b_heads.astype(jnp.float32))
    b_comb = b_comb.at[:, 0, _N_LOGITS].set(jnp.float32(b_bb[0]))
    b_comb = b_comb.at[:, 0, _N_LOGITS + 1].set(jnp.float32(b_bb[1]))

    # bb weight rows are PyTorch NCHW-flatten order (c*HW + hw); permute once to
    # (2, HW, Cout) NHWC order, zero-pad, ship as bf16 (halves HBM/VMEM bytes).
    w_bb_nhwc = jnp.transpose(w_bb.astype(jnp.float32).reshape(Cout, HW, 2), (2, 1, 0))
    w_bb_nhwc = jnp.pad(w_bb_nhwc,
                        ((0, 0), (0, HW_pad - HW), (0, Cout_pad - Cout))).astype(jnp.bfloat16)

    return dict(w_conv_mat=w_conv_mat, b_conv=b_conv_pad,
                w_heads=w_heads_pad, b_heads=b_comb, w_bb_nhwc=w_bb_nhwc)


# ------------------------------ fused forward ------------------------------

@jax.jit
def _forward_jit(head_idx, x, params):
    B, Cin, H, W = x.shape
    Ho = (H + 2 - 3) // 2 + 1
    Wo = (W + 2 - 3) // 2 + 1
    HW = Ho * Wo
    K_pad, Cout_pad = params["w_conv_mat"].shape
    n_heads, _, out_pad = params["w_heads"].shape
    assert K_pad >= 9 * Cin
    TILE_R, HW_pad = _row_tiling(HW)
    assert params["w_bb_nhwc"].shape[1] == HW_pad
    n_tiles = HW_pad // TILE_R
    single_step = (n_tiles == 1)

    patches = _im2col_padded(x, HW_pad, K_pad)                 # (B, HW_pad, K_pad) bf16

    kernel = functools.partial(
        _fused_kernel, hw=HW, tile_r=TILE_R, inv_hw=1.0 / float(HW),
        need_mask=(HW_pad != HW), single_step=single_step)

    # Double-buffered streamed patches + resident weights + accumulators (bytes).
    footprint = (2 * TILE_R * K_pad * 2                 # patch tile, bf16, 2 bufs
                 + K_pad * Cout_pad * 2                 # conv weight (bf16, resident)
                 + n_heads * Cout_pad * out_pad * 4     # head weights (f32, resident)
                 + n_heads * out_pad * 4                # head biases
                 + 2 * HW_pad * Cout_pad * 2            # bb weight (bf16, resident)
                 + 4 * Cout_pad * 4                     # conv bias + accumulators
                 + 2 * out_pad * 4)                     # output block (2 bufs)
    vmem_limit = _vmem_limit_bytes(footprint)

    scratch_shapes = [] if single_step else [
        pltpu.VMEM((1, Cout_pad), jnp.float32),          # pooled-sum accumulator
        pltpu.VMEM((1, Cout_pad), jnp.float32),          # bb output-0 accumulator
        pltpu.VMEM((1, Cout_pad), jnp.float32),          # bb output-1 accumulator
    ]

    grid_spec = pltpu.PrefetchScalarGridSpec(
        num_scalar_prefetch=1,
        grid=(B, n_tiles),
        in_specs=[
            pl.BlockSpec((1, TILE_R, K_pad), lambda b, j, hid: (b, j, 0)),    # streamed
            pl.BlockSpec((K_pad, Cout_pad), lambda b, j, hid: (0, 0)),        # resident
            pl.BlockSpec((1, Cout_pad), lambda b, j, hid: (0, 0)),            # resident
            pl.BlockSpec((n_heads, Cout_pad, out_pad), lambda b, j, hid: (0, 0, 0)),
            pl.BlockSpec((n_heads, 1, out_pad), lambda b, j, hid: (0, 0, 0)),
            pl.BlockSpec((2, HW_pad, Cout_pad), lambda b, j, hid: (0, 0, 0)),  # resident
        ],
        out_specs=pl.BlockSpec((1, 1, out_pad), lambda b, j, hid: (b, 0, 0)),
        scratch_shapes=scratch_shapes,
    )

    out = pl.pallas_call(
        kernel,
        out_shape=jax.ShapeDtypeStruct((B, 1, out_pad), jnp.float32),
        grid_spec=grid_spec,
        compiler_params=pltpu.CompilerParams(
            dimension_semantics=("parallel", "arbitrary"),
            vmem_limit_bytes=vmem_limit),
    )(head_idx, patches, params["w_conv_mat"], params["b_conv"],
      params["w_heads"], params["b_heads"], params["w_bb_nhwc"])

    out = out.reshape(B, out_pad)
    return out[:, :_N_LOGITS], out[:, _N_LOGITS:_N_LOGITS + _N_BB]


def three_view_forward(x, heads, params):
    assert x.ndim == 4
    assert len(heads) == x.shape[0]
    head_idx = jnp.array([_HEAD_IDX[h] for h in heads], dtype=jnp.int32)
    return _forward_jit(head_idx, x, params)


# --------------------------- pure-JAX reference ----------------------------

def reference_forward(x, heads, raw_params):
    """Independent reference using PyTorch-layout params.  Inputs that the
    kernel intentionally carries in bf16 (conv patches / conv weight / bb
    weight) are rounded to bf16 here too; all accumulation is f32."""
    w_conv, b_conv, w_heads, b_heads, w_bb, b_bb = raw_params
    B, Cin, H, W = x.shape
    Cout = w_conv.shape[0]
    patches, Ho, Wo = _im2col(x, 3, 3, 2, 1)                   # (B, HW, K)
    w_mat = jnp.transpose(w_conv, (2, 3, 1, 0)).reshape(9 * Cin, Cout)
    p = patches.astype(jnp.bfloat16).astype(jnp.float32)
    wm = w_mat.astype(jnp.bfloat16).astype(jnp.float32)
    feats = jax.nn.relu(jnp.einsum("bmk,kc->bmc", p, wm) + b_conv.reshape(1, 1, Cout))
    pooled = feats.mean(axis=1)                                # (B, Cout)
    y_all = jnp.einsum("bc,hcd->bhd", pooled, w_heads) + b_heads[None]
    idx = jnp.array([_HEAD_IDX[h] for h in heads])
    result = y_all[jnp.arange(B), idx]
    feats_nchw = jnp.transpose(feats.reshape(B, Ho, Wo, Cout), (0, 3, 1, 2))
    w_bb_r = w_bb.astype(jnp.bfloat16).astype(jnp.float32)
    result_co = feats_nchw.reshape(B, -1) @ w_bb_r + b_bb.reshape(1, 2)
    return result, result_co


# ---------------------------------- main ----------------------------------

def _run_case(key, B, Cin, H, W, Cout, heads):
    ks = jax.random.split(key, 7)
    Ho = (H + 2 - 3) // 2 + 1
    Wo = (W + 2 - 3) // 2 + 1

    # Deterministic synthetic parameters in PyTorch layouts (module __init__ shapes).
    w_conv = 0.1 * jax.random.normal(ks[0], (Cout, Cin, 3, 3), jnp.float32)
    b_conv = 0.1 * jax.random.normal(ks[1], (Cout,), jnp.float32)
    w_heads = 0.1 * jax.random.normal(ks[2], (3, Cout, _N_LOGITS), jnp.float32)
    b_heads = 0.1 * jax.random.normal(ks[3], (3, _N_LOGITS), jnp.float32)
    w_bb = 0.05 * jax.random.normal(ks[4], (Cout * Ho * Wo, _N_BB), jnp.float32)
    b_bb = 0.05 * jax.random.normal(ks[5], (_N_BB,), jnp.float32)
    x = jax.random.normal(ks[6], (B, Cin, H, W), jnp.float32)

    params = prepare_params(w_conv, b_conv, w_heads, b_heads, w_bb, b_bb, Ho, Wo)

    result, result_co = three_view_forward(x, heads, params)
    result = jax.block_until_ready(result)
    result_co = jax.block_until_ready(result_co)

    ref_result, ref_result_co = reference_forward(
        x, heads, (w_conv, b_conv, w_heads, b_heads, w_bb, b_bb))

    assert result.shape == (B, _N_LOGITS) and result_co.shape == (B, _N_BB)
    assert bool(jnp.allclose(result, ref_result, rtol=1e-3, atol=2e-3))
    assert bool(jnp.allclose(result_co, ref_result_co, rtol=1e-3, atol=2e-3))


if __name__ == "__main__":
    root = jax.random.PRNGKey(0)
    # Case 1 (demo shapes): HW=64 -> single grid step per sample, no accumulators.
    _run_case(jax.random.fold_in(root, 0),
              B=2, Cin=4, H=16, W=16, Cout=32, heads=["spinal", "neural"])
    # Case 2: HW=961 -> multi-tile reduction + padded-tail row masking path.
    _run_case(jax.random.fold_in(root, 1),
              B=2, Cin=4, H=62, W=62, Cout=32, heads=["subart", "spinal"])
    print("KERNEL_OK")
</pallas_src>

<mosaic_0001>
module attributes {stable_mosaic.version = 11 : i64} {
  func.func @_fused_kernel(%arg0: i32, %arg1: i32, %arg2: memref<2xi32, #tpu.memory_space<smem>>, %arg3: memref<1x64x128xbf16, #tpu.memory_space<vmem>>, %arg4: memref<128x128xbf16, #tpu.memory_space<vmem>>, %arg5: memref<1x128xf32, #tpu.memory_space<vmem>>, %arg6: memref<3x128x128xf32, #tpu.memory_space<vmem>>, %arg7: memref<3x1x128xf32, #tpu.memory_space<vmem>>, %arg8: memref<2x64x128xbf16, #tpu.memory_space<vmem>>, %arg9: memref<1x1x128xf32, #tpu.memory_space<vmem>>) attributes {dimension_semantics = [#tpu.dimension_semantics<parallel>, #tpu.dimension_semantics<arbitrary>], iteration_bounds = array<i64: 2, 1>, scalar_prefetch = 1 : i64, scratch_operands = 0 : i64, tpu.core_type = #tpu.core_type<tc>, window_params = [{transform_indices = @transform_0, window_bounds = array<i64: 1, 64, 128>}, {pipeline_mode = #tpu.pipeline_mode<synchronous>, transform_indices = @transform_1, window_bounds = array<i64: 128, 128>}, {pipeline_mode = #tpu.pipeline_mode<synchronous>, transform_indices = @transform_2, window_bounds = array<i64: 1, 128>}, {pipeline_mode = #tpu.pipeline_mode<synchronous>, transform_indices = @transform_3, window_bounds = array<i64: 3, 128, 128>}, {pipeline_mode = #tpu.pipeline_mode<synchronous>, transform_indices = @transform_4, window_bounds = array<i64: 3, 1, 128>}, {pipeline_mode = #tpu.pipeline_mode<synchronous>, transform_indices = @transform_5, window_bounds = array<i64: 2, 64, 128>}, {transform_indices = @transform_6, window_bounds = array<i64: 1, 1, 128>}]} {
    %c0 = arith.constant 0 : index
    %c0_0 = arith.constant 0 : index
    %c0_1 = arith.constant 0 : index
    %0 = vector.load %arg3[%c0, %c0_0, %c0_1] : memref<1x64x128xbf16, #tpu.memory_space<vmem>>, vector<1x64x128xbf16>
    %1 = vector.shape_cast %0 : vector<1x64x128xbf16> to vector<64x128xbf16>
    %c0_2 = arith.constant 0 : index
    %c0_3 = arith.constant 0 : index
    %2 = vector.load %arg4[%c0_2, %c0_3] : memref<128x128xbf16, #tpu.memory_space<vmem>>, vector<128x128xbf16>
    %cst = arith.constant dense<0.000000e+00> : vector<64x128xf32>
    %3 = tpu.matmul %1, %2, %cst {dimension_numbers = #tpu.dot_dimension_numbers<[1], [0], [0], [1], [0, 0, 1, 1], [], []>} : vector<64x128xbf16>, vector<128x128xbf16>, vector<64x128xf32> -> vector<64x128xf32>
    %c0_4 = arith.constant 0 : index
    %c0_5 = arith.constant 0 : index
    %4 = vector.load %arg5[%c0_4, %c0_5] : memref<1x128xf32, #tpu.memory_space<vmem>>, vector<1x128xf32>
    %5 = vector.broadcast %4 : vector<1x128xf32> to vector<64x128xf32>
    %6 = arith.addf %3, %5 : vector<64x128xf32>
    %cst_6 = arith.constant 0.000000e+00 : f32
    %7 = vector.broadcast %cst_6 : f32 to vector<64x128xf32>
    %8 = arith.maximumf %6, %7 : vector<64x128xf32>
    %c64_i32 = arith.constant 64 : i32
    %9 = arith.muli %arg1, %c64_i32 : i32
    %10 = tpu.assume_multiple %9, 8 : i32
    %c0_7 = arith.constant 0 : index
    %11 = arith.index_cast %10 : i32 to index
    %c0_8 = arith.constant 0 : index
    %12 = vector.load %arg8[%c0_7, %11, %c0_8] : memref<2x64x128xbf16, #tpu.memory_space<vmem>>, vector<1x64x128xbf16>
    %13 = vector.shape_cast %12 : vector<1x64x128xbf16> to vector<64x128xbf16>
    %14 = arith.extf %13 : vector<64x128xbf16> to vector<64x128xf32>
    %c1 = arith.constant 1 : index
    %15 = arith.index_cast %10 : i32 to index
    %c0_9 = arith.constant 0 : index
    %16 = vector.load %arg8[%c1, %15, %c0_9] : memref<2x64x128xbf16, #tpu.memory_space<vmem>>, vector<1x64x128xbf16>
    %17 = vector.shape_cast %16 : vector<1x64x128xbf16> to vector<64x128xbf16>
    %18 = arith.extf %17 : vector<64x128xbf16> to vector<64x128xf32>
    %19 = arith.mulf %8, %14 : vector<64x128xf32>
    %cst_10 = arith.constant dense<0.000000e+00> : vector<128xf32>
    %20 = vector.multi_reduction <add>, %19, %cst_10 [0] : vector<64x128xf32> to vector<128xf32>
    %21 = vector.shape_cast %20 : vector<128xf32> to vector<1x128xf32>
    %22 = arith.mulf %8, %18 : vector<64x128xf32>
    %cst_11 = arith.constant dense<0.000000e+00> : vector<128xf32>
    %23 = vector.multi_reduction <add>, %22, %cst_11 [0] : vector<64x128xf32> to vector<128xf32>
    %24 = vector.shape_cast %23 : vector<128xf32> to vector<1x128xf32>
    %cst_12 = arith.constant dense<0.000000e+00> : vector<128xf32>
    %25 = vector.multi_reduction <add>, %8, %cst_12 [0] : vector<64x128xf32> to vector<128xf32>
    %26 = vector.shape_cast %25 : vector<128xf32> to vector<1x128xf32>
    %cst_13 = arith.constant 1.562500e-02 : f32
    %27 = vector.broadcast %cst_13 : f32 to vector<1x128xf32>
    %28 = arith.mulf %26, %27 : vector<1x128xf32>
    %29 = arith.index_cast %arg0 : i32 to index
    %30 = memref.load %arg2[%29] : memref<2xi32, #tpu.memory_space<smem>>
    %31 = arith.index_cast %30 : i32 to index
    %c0_14 = arith.constant 0 : index
    %c0_15 = arith.constant 0 : index
    %32 = vector.load %arg6[%31, %c0_14, %c0_15] : memref<3x128x128xf32, #tpu.memory_space<vmem>>, vector<1x128x128xf32>
    %33 = vector.shape_cast %32 : vector<1x128x128xf32> to vector<128x128xf32>
    %cst_16 = arith.constant dense<0.000000e+00> : vector<1x128xf32>
    %34 = tpu.matmul %28, %33, %cst_16 {dimension_numbers = #tpu.dot_dimension_numbers<[1], [0], [0], [1], [0, 0, 1, 1], [], []>} : vector<1x128xf32>, vector<128x128xf32>, vector<1x128xf32> -> vector<1x128xf32>
    %35 = arith.index_cast %30 : i32 to index
    %c0_17 = arith.constant 0 : index
    %c0_18 = arith.constant 0 : index
    %36 = vector.load %arg7[%35, %c0_17, %c0_18] : memref<3x1x128xf32, #tpu.memory_space<vmem>>, vector<1x1x128xf32>
    %37 = vector.shape_cast %36 : vector<1x1x128xf32> to vector<1x128xf32>
    %38 = arith.addf %34, %37 : vector<1x128xf32>
    %39 = vector.shape_cast %21 : vector<1x128xf32> to vector<1x1x128xf32>
    %cst_19 = arith.constant dense<0.000000e+00> : vector<1xf32>
    %40 = vector.multi_reduction <add>, %39, %cst_19 [1, 2] : vector<1x1x128xf32> to vector<1xf32>
    %41 = vector.shape_cast %40 : vector<1xf32> to vector<1x1x1xf32>
    %42 = vector.extract %41[0, 0, 0] : f32 from vector<1x1x1xf32>
    %43 = vector.shape_cast %24 : vector<1x128xf32> to vector<1x1x128xf32>
    %cst_20 = arith.constant dense<0.000000e+00> : vector<1xf32>
    %44 = vector.multi_reduction <add>, %43, %cst_20 [1, 2] : vector<1x1x128xf32> to vector<1xf32>
    %45 = vector.shape_cast %44 : vector<1xf32> to vector<1x1x1xf32>
    %46 = vector.extract %45[0, 0, 0] : f32 from vector<1x1x1xf32>
    %47 = tpu.iota {dimensions = array<i32: 1>} : vector<1x128xi32>
    %c30_i32 = arith.constant 30 : i32
    %48 = vector.broadcast %c30_i32 : i32 to vector<1x128xi32>
    %49 = arith.cmpi eq, %47, %48 : vector<1x128xi32>
    %c31_i32 = arith.constant 31 : i32
    %50 = vector.broadcast %c31_i32 : i32 to vector<1x128xi32>
    %51 = arith.cmpi eq, %47, %50 : vector<1x128xi32>
    %cst_21 = arith.constant 0.000000e+00 : f32
    %52 = vector.broadcast %46 : f32 to vector<1x128xf32>
    %53 = vector.broadcast %cst_21 : f32 to vector<1x128xf32>
    %54 = arith.select %51, %52, %53 : vector<1x128xi1>, vector<1x128xf32>
    %55 = vector.broadcast %42 : f32 to vector<1x128xf32>
    %56 = arith.select %49, %55, %54 : vector<1x128xi1>, vector<1x128xf32>
    %57 = arith.addf %38, %56 : vector<1x128xf32>
    %c0_22 = arith.constant 0 : index
    %c0_23 = arith.constant 0 : index
    %c0_24 = arith.constant 0 : index
    %58 = vector.load %arg9[%c0_22, %c0_23, %c0_24] : memref<1x1x128xf32, #tpu.memory_space<vmem>>, vector<1x1x128xf32>
    %59 = vector.shape_cast %58 : vector<1x1x128xf32> to vector<1x128xf32>
    %60 = vector.shape_cast %57 : vector<1x128xf32> to vector<1x1x128xf32>
    tpu.vector_store %arg9[%c0_22, %c0_23, %c0_24], %60 {strides = array<i32>} : memref<1x1x128xf32, #tpu.memory_space<vmem>>, vector<1x1x128xf32>,
    return
  }
  func.func @transform_0(%arg0: i32, %arg1: i32, %arg2: memref<2xi32, #tpu.memory_space<smem>>) -> (i32, i32, i32) {
    %c0_i32 = arith.constant 0 : i32
    %c0_i32_0 = arith.constant 0 : i32
    return %arg0, %arg1, %c0_i32 : i32, i32, i32
  }
  func.func @transform_1(%arg0: i32, %arg1: i32, %arg2: memref<2xi32, #tpu.memory_space<smem>>) -> (i32, i32) {
    %c0_i32 = arith.constant 0 : i32
    %c0_i32_0 = arith.constant 0 : i32
    %c0_i32_1 = arith.constant 0 : i32
    return %c0_i32, %c0_i32_0 : i32, i32
  }
  func.func @transform_2(%arg0: i32, %arg1: i32, %arg2: memref<2xi32, #tpu.memory_space<smem>>) -> (i32, i32) {
    %c0_i32 = arith.constant 0 : i32
    %c0_i32_0 = arith.constant 0 : i32
    %c0_i32_1 = arith.constant 0 : i32
    return %c0_i32, %c0_i32_0 : i32, i32
  }
  func.func @transform_3(%arg0: i32, %arg1: i32, %arg2: memref<2xi32, #tpu.memory_space<smem>>) -> (i32, i32, i32) {
    %c0_i32 = arith.constant 0 : i32
    %c0_i32_0 = arith.constant 0 : i32
    %c0_i32_1 = arith.constant 0 : i32
    %c0_i32_2 = arith.constant 0 : i32
    return %c0_i32, %c0_i32_0, %c0_i32_1 : i32, i32, i32
  }
  func.func @transform_4(%arg0: i32, %arg1: i32, %arg2: memref<2xi32, #tpu.memory_space<smem>>) -> (i32, i32, i32) {
    %c0_i32 = arith.constant 0 : i32
    %c0_i32_0 = arith.constant 0 : i32
    %c0_i32_1 = arith.constant 0 : i32
    %c0_i32_2 = arith.constant 0 : i32
    return %c0_i32, %c0_i32_0, %c0_i32_1 : i32, i32, i32
  }
  func.func @transform_5(%arg0: i32, %arg1: i32, %arg2: memref<2xi32, #tpu.memory_space<smem>>) -> (i32, i32, i32) {
    %c0_i32 = arith.constant 0 : i32
    %c0_i32_0 = arith.constant 0 : i32
    %c0_i32_1 = arith.constant 0 : i32
    %c0_i32_2 = arith.constant 0 : i32
    return %c0_i32, %c0_i32_0, %c0_i32_1 : i32, i32, i32
  }
  func.func @transform_6(%arg0: i32, %arg1: i32, %arg2: memref<2xi32, #tpu.memory_space<smem>>) -> (i32, i32, i32) {
    %c0_i32 = arith.constant 0 : i32
    %c0_i32_0 = arith.constant 0 : i32
    %c0_i32_1 = arith.constant 0 : i32
    return %arg0, %c0_i32, %c0_i32_0 : i32, i32, i32
  }
}

</mosaic_0001>

<bundles_post_ra>
// kernel: _forward_jit.1
= control target key start
LH: loop header
LB: loop body
LE: loop exit
PB: predicated region body
PF: predicated region fallthrough
CT: control target
= control target key end

     0   :  { %s1180_s0 = inlined_call_operand.vmem [shape: s32[2], index: 0, kind: input, shape index: {}]   ;;  %s1181_s1 = inlined_call_operand.vmem [shape: bf16[2,64,128], index: 1, kind: input, shape index: {}]   ;;  %s1182_s2 = inlined_call_operand.vmem [shape: bf16[128,128], index: 2, kind: input, shape index: {}]   ;;  %s1183_s3 = inlined_call_operand.vmem [shape: f32[1,128], index: 3, kind: input, shape index: {}]   ;;  %s1184_s4 = inlined_call_operand.vmem [shape: f32[3,128,128], index: 4, kind: input, shape index: {}]   ;;  %s1185_s5 = inlined_call_operand.vmem [shape: f32[3,1,128], index: 5, kind: input, shape index: {}]   ;;  %s1186_s6 = inlined_call_operand.vmem [shape: bf16[2,64,128], index: 6, kind: input, shape index: {}]   ;;  %s1187_s7 = inlined_call_operand.vmem [shape: f32[2,1,128], index: 7, kind: output, shape index: {}]  }
   0x1   :  { %s12_s26 = sshll.u32 %s1180_s0, 4  ;;  %s13_s26 = int_to_ptr.vmem [resolvable:$true] %s12_s26 }
   0x2   :  { %s974_s27 = scalar_lea.vmem %s13_s26, 16  ;;  %p979_p1 = scmp.lt.s32.totalorder %s13_s26, %s13_s26 }
   0x3   :  { %p975_p0 = scmp.ne.s32.totalorder %s13_s26, %s974_s27  ;;  %p980_p2 = scmp.lt.s32.totalorder %s974_s27, %s974_s27 }
   0x5   :  { %p981_p3 = por %p980_p2, %p979_p1 }
   0x7   :  { %p982_p4 = pnand %p981_p3, %p975_p0 }
   0x9   :  { %985 = shalt.err (!%p982_p4)  }
   0xa   :  { %s1012_s28 = smov [#allocation3]  }
   0xb   :  { %15 = dma.vmem_to_smem %s13_s26, 16, %s1012_s28, [#allocation2] }
   0xc   :  { %998 = dma.done.wait [#allocation2], 16 }
   0xd   :  { %999 = vsyncadd [#allocation2], 4294967280 }
   0xe   :  { %17 = sfence }
   0xf   :  { %s1059_s29 = smov 0   ;;  %s1061_s30 = smov 0  }
  0x10   :  { %s1063_s8 = smov 0  }
  0x11 LB: > { %s35_s0 = sadd.s32 1, %s1006_s30  ;;  %p751_p5 = scmp.ge.s32.totalorder %s1010_s8, 1  ;;  %s1010_s8 = sphi %s1063_s8, %s23_s8   ;;  %s1006_s30 = sphi %s1061_s30, %s1189_s30   ;;  %s1002_s29 = sphi %s1059_s29, %s1188_s29  }
  0x12   : > { %p37_p6 = scmp.ge.s32.totalorder %s35_s0, 2  ;;  %p238_p7 = scmp.lt.s32.totalorder %s1010_s8, 3 }
  0x14   : > { %s1191_s0 = smov (%p37_p6, %s35_s0), 0  ;;  %p239_p8 = pnand %p751_p5, %p238_p7 }
  0x15   : > { %v962_v0 = vld [vmem:[%s1182_s2] sm:$0xff] (!%p239_p8)   ;;  %p271_p9 = scmp.lt.s32.totalorder (!%p239_p8), %s1002_s29, 1  ;;  %v963_v1 = vld [vmem:[%s1182_s2 + $0x8] sm:$0xff] (!%p239_p8)   ;;  %v964_v2 = vld [vmem:[%s1182_s2 + $0x10] sm:$0xff] (!%p239_p8)   ;;  %s1112_s10 = sld [smem:[#allocation3 + %s1002_s29]] (!%p239_p8)  ;;  %v1013_v14 = vmov (!%p239_p8), 0.0|0.0  }
  0x16   : > { %242 = sbr.rel (%p239_p8) target bundleno = 519 (0x207), region = 44  ;;  %847 = vmatprep.subr.bf16.mxu0 (!%p239_p8), %v962_v0  ;;  %v965_v3 = vld [vmem:[%s1182_s2 + $0x18] sm:$0xff] (!%p239_p8)   ;;  %v966_v5 = vld [vmem:[%s1182_s2 + $0x20] sm:$0xff] (!%p239_p8)   ;;  %v967_v6 = vld [vmem:[%s1182_s2 + $0x28] sm:$0xff] (!%p239_p8)   ;;  %906 = vmatprep.subr.bf16.mxu1 (!%p239_p8), %v1013_v14  ;;  %vm1014_vm0 = vmmov (!%p239_p8), 0   ;;  %v1015_v30 = vmov (!%p239_p8), 0.0  }
  0x17   : > { %848 = vmatpush3.bf16.msra.mxu0 (!%p239_p8), %v962_v0  ;;  %v968_v7 = vld [vmem:[%s1182_s2 + $0x30] sm:$0xff] (!%p239_p8)   ;;  %v969_v8 = vld [vmem:[%s1182_s2 + $0x38] sm:$0xff] (!%p239_p8)   ;;  %903 = vmatprep.mubr.msk.f32.mxu1 (!%p239_p8), %vm1014_vm0, %v1015_v30  ;;  %v754_v38 = vld [vmem:[%s1183_s3] ss:$0 sm:$0xff] (!%p239_p8)  ;;  %vm647_vm1 = vcmask (!%p239_p8), 1040384  }
  0x18   : > { %849 = vmatprep.subr.bf16.mxu0 (!%p239_p8), %v963_v1  ;;  %v780_v40 = vld [vmem:[%s1186_s6] sm:$0xff] (!%p239_p8)   ;;  %v811_v44 = vld [vmem:[%s1186_s6 + $0x8] sm:$0xff] (!%p239_p8)   ;;  %v812_v56 = vld [vmem:[%s1186_s6 + $0x10] sm:$0xff] (!%p239_p8)  }
  0x19   : > { %v814_v41 = vld [vmem:[%s1186_s6 + $0x20] sm:$0xff] (!%p239_p8)   ;;  %v815_v45 = vld [vmem:[%s1186_s6 + $0x28] sm:$0xff] (!%p239_p8)   ;;  %v781_v48 = vunpack.c.l.bf16 (!%p239_p8), %v780_v40  ;;  %v782_v54 = vunpack.c.h.bf16 (!%p239_p8), %v780_v40  ;;  %v785_v58 = vunpack.c.l.bf16 (!%p239_p8), %v811_v44  ;;  %v786_v60 = vunpack.c.h.bf16 (!%p239_p8), %v811_v44  ;;  %v816_v62 = vld [vmem:[%s1186_s6 + $0x30] sm:$0xff] (!%p239_p8)  }
  0x1a   : > { %v797_v49 = vunpack.c.l.bf16 (!%p239_p8), %v814_v41  ;;  %v798_v55 = vunpack.c.h.bf16 (!%p239_p8), %v814_v41  ;;  %v801_v59 = vunpack.c.l.bf16 (!%p239_p8), %v815_v45 }
  0x1b   : > { %850 = vmatpush3.bf16.msra.mxu0 (!%p239_p8), %v963_v1  ;;  %s775_s11 = sshll.u32 (!%p239_p8), %s1112_s10, 7  ;;  %v802_v1 = vunpack.c.h.bf16 (!%p239_p8), %v815_v45 }
  0x1c   : > { %851 = vmatprep.subr.bf16.mxu0 (!%p239_p8), %v964_v2  ;;  %s1118_s15 = scalar_lea.vmem (!%p239_p8), %s1184_s4, %s775_s11 }
  0x1d   : > { %s1087_s13 = scalar_select %p271_p9, %s1002_s29, 1  ;;  %v559_v12 = vld [vmem:[%s1118_s15] sm:$0xff]  ;;  %v560_v13 = vld [vmem:[%s1118_s15 + $0x8] sm:$0xff]  ;;  %v561_v16 = vld [vmem:[%s1118_s15 + $0x10] sm:$0xff] }
  0x1e   : > { %v907_v15 = vpack.c.bf16 %v560_v13, %v559_v12  ;;  %v562_v17 = vld [vmem:[%s1118_s15 + $0x18] sm:$0xff]  ;;  %v563_v19 = vld [vmem:[%s1118_s15 + $0x20] sm:$0xff]  ;;  %v564_v20 = vld [vmem:[%s1118_s15 + $0x28] sm:$0xff]  ;;  %v805_v13 = vunpack.c.l.bf16 %v816_v62 }
  0x1f   : > { %s778_s16 = sshll.u32 %s1087_s13, 5  ;;  %852 = vmatpush3.bf16.msra.mxu0 %v964_v2  ;;  %v910_v18 = vpack.c.bf16 %v562_v17, %v561_v16  ;;  %v913_v21 = vpack.c.bf16 %v564_v20, %v563_v19  ;;  %v565_v22 = vld [vmem:[%s1118_s15 + $0x30] sm:$0xff]  ;;  %v566_v23 = vld [vmem:[%s1118_s15 + $0x38] sm:$0xff]  ;;  %v567_v25 = vld [vmem:[%s1118_s15 + $0x40] sm:$0xff]  ;;  %v789_v2 = vunpack.c.l.bf16 %v812_v56  ;;  %s282_s21 = scalar_lea.vmem %s1187_s7, %s1087_s13 }
  0x20   : > { %s278_s19 = scalar_lea.vmem %s1181_s1, %s778_s16  ;;  %853 = vmatprep.subr.bf16.mxu0 %v965_v3  ;;  %908 = vmatpush3.bf16.msra.mxu1 %v907_v15  ;;  %v916_v24 = vpack.c.bf16 %v566_v23, %v565_v22  ;;  %v568_v26 = vld [vmem:[%s1118_s15 + $0x48] sm:$0xff]  ;;  %v569_v28 = vld [vmem:[%s1118_s15 + $0x50] sm:$0xff]  ;;  %v570_v29 = vld [vmem:[%s1118_s15 + $0x58] sm:$0xff]  ;;  %s575_s16 = scalar_lea.vmem %s1185_s5, %s1112_s10 }
  0x21   : > { %v970_v4 = vld [vmem:[%s278_s19] sm:$0xff]   ;;  %v971_v9 = vld [vmem:[%s278_s19 + $0x8] sm:$0xff]   ;;  %v972_v10 = vld [vmem:[%s278_s19 + $0x10] sm:$0xff]   ;;  %909 = vmatprep.subr.bf16.mxu1 %v1013_v14  ;;  %v919_v27 = vpack.c.bf16 %v568_v26, %v567_v25  ;;  %v922_v31 = vpack.c.bf16 %v570_v29, %v569_v28 }
  0x22   : > { %863 = vmatprep.mubr.bf16.mxu0 %v970_v4  ;;  %v973_v11 = vld [vmem:[%s278_s19 + $0x18] sm:$0xff]   ;;  %v571_v32 = vld [vmem:[%s1118_s15 + $0x60] sm:$0xff]  ;;  %v572_v33 = vld [vmem:[%s1118_s15 + $0x68] sm:$0xff] }
  0x23   : > { %854 = vmatpush3.bf16.msra.mxu0 %v965_v3  ;;  %v925_v34 = vpack.c.bf16 %v572_v33, %v571_v32  ;;  %v573_v35 = vld [vmem:[%s1118_s15 + $0x70] sm:$0xff]  ;;  %v574_v36 = vld [vmem:[%s1118_s15 + $0x78] sm:$0xff]  ;;  %v806_v32 = vunpack.c.h.bf16 %v816_v62 }
  0x24   : > { %855 = vmatprep.subr.bf16.mxu0 %v966_v5  ;;  %911 = vmatpush3.bf16.msra.mxu1 %v910_v18  ;;  %v928_v37 = vpack.c.bf16 %v574_v36, %v573_v35  ;;  %v817_v26 = vld [vmem:[%s1186_s6 + $0x38] sm:$0xff]  }
  0x25   : > { %912 = vmatprep.subr.bf16.mxu1 %v1013_v14  ;;  %v810_v45 = vunpack.c.h.bf16 %v817_v26 }
  0x27   : > { %856 = vmatpush3.bf16.msra.mxu0 %v966_v5 }
  0x28   : > { %857 = vmatprep.subr.bf16.mxu0 %v967_v6  ;;  %914 = vmatpush3.bf16.msra.mxu1 %v913_v21 }
  0x29   : > { %915 = vmatprep.subr.bf16.mxu1 %v1013_v14 }
  0x2b   : > { %858 = vmatpush3.bf16.msra.mxu0 %v967_v6 }
  0x2c   : > { %859 = vmatprep.subr.bf16.mxu0 %v968_v7  ;;  %917 = vmatpush3.bf16.msra.mxu1 %v916_v24 }
  0x2d   : > { %918 = vmatprep.subr.bf16.mxu1 %v1013_v14 }
  0x2f   : > { %860 = vmatpush3.bf16.msra.mxu0 %v968_v7 }
  0x30   : > { %861 = vmatprep.subr.bf16.mxu0 %v969_v8  ;;  %920 = vmatpush3.bf16.msra.mxu1 %v919_v27 }
  0x31   : > { %921 = vmatprep.subr.bf16.mxu1 %v1013_v14 }
  0x33   : > { %862 = vmatpush3.bf16.msra.mxu0 %v969_v8  ;;  %v813_v8 = vld [vmem:[%s1186_s6 + $0x18] sm:$0xff]  }
  0x34   : > { %923 = vmatpush3.bf16.msra.mxu1 %v922_v31  ;;  %v793_v21 = vunpack.c.l.bf16 %v813_v8  ;;  %v790_v31 = vunpack.c.h.bf16 %v812_v56  ;;  %v794_v44 = vunpack.c.h.bf16 %v813_v8 }
  0x35   : > { %924 = vmatprep.subr.bf16.mxu1 %v1013_v14 }
  0x36   : > { %864 = vmatmul.mubr.bf16.vlgmr.msra.gmra.mrb[0].mxu0 %v971_v9 }
  0x37   : > { %867 = vmatprep.mubr.bf16.mxu0 %v972_v10 }
  0x38   : > { %926 = vmatpush3.bf16.msra.mxu1 %v925_v34 }
  0x39   : > { %927 = vmatprep.subr.bf16.mxu1 %v1013_v14 }
  0x3c   : > { %929 = vmatpush3.bf16.msra.mxu1 %v928_v37  ;;  %v809_v37 = vunpack.c.l.bf16 %v817_v26 }
  0x3e   : > { %868 = vmatmul.mubr.bf16.gmra.mrb[4].mxu0 %v973_v11 }
 0x109   : > { %v865_v39 = vpop.f32.mrb[0].mxu0 }
 0x10a   : > { %v430_v42 = vadd.f32 %v865_v39, %v754_v38  ;;  %v421_v43 = vpop.f32.mrb[1].mxu0 }
 0x10b   : > { %v422_v46 = vadd.f32 %v754_v38, %v421_v43  ;;  %v866_v47 = vpop.f32.mrb[2].mxu0 }
 0x10c   : > { %v433_v50 = vadd.f32 %v866_v47, %v754_v38  ;;  %v424_v51 = vpop.f32.mrb[3].mxu0  ;;  %v454_v57 = vmax.f32 %v430_v42, 0.0 }
 0x10d   : > { %v452_v52 = vmax.f32 %v422_v46, 0.0  ;;  %v425_v53 = vadd.f32 %v754_v38, %v424_v51 }
 0x10e   : > { %v455_v0 = vmax.f32 %v433_v50, 0.0  ;;  %v502_v9 = vmul.f32 %v785_v58, %v454_v57  ;;  %v523_v10 = vmul.f32 %v801_v59, %v454_v57 }
 0x10f   : > { %v453_v61 = vmax.f32 %v425_v53, 0.0  ;;  %v500_v63 = vmul.f32 %v781_v48, %v452_v52  ;;  %v521_v3 = vmul.f32 %v797_v49, %v452_v52 }
 0x110   : > { %v503_v19 = vmul.f32 %v786_v60, %v455_v0  ;;  %v524_v20 = vmul.f32 %v802_v1, %v455_v0 }
 0x111   : > { %v501_v4 = vmul.f32 %v782_v54, %v453_v61  ;;  %v522_v5 = vmul.f32 %v798_v55, %v453_v61  ;;  %v542_v6 = vadd.f32 %v453_v61, %v452_v52  ;;  %v869_v7 = vpop.f32.mrb[4].mxu0 }
 0x112   : > { %v446_v11 = vadd.f32 %v869_v7, %v754_v38  ;;  %v437_v12 = vpop.f32.mrb[5].mxu0 }
 0x113   : > { %v508_v14 = vadd.f32 %v501_v4, %v500_v63  ;;  %v529_v15 = vadd.f32 %v522_v5, %v521_v3  ;;  %v543_v16 = vadd.f32 %v542_v6, %v454_v57  ;;  %v438_v17 = vadd.f32 %v754_v38, %v437_v12  ;;  %v870_v18 = vpop.f32.mrb[6].mxu0 }
 0x114   : > { %v449_v22 = vadd.f32 %v870_v18, %v754_v38  ;;  %v440_v23 = vpop.f32.mrb[7].mxu0  ;;  %v458_v29 = vmax.f32 %v446_v11, 0.0 }
 0x115   : > { %v509_v24 = vadd.f32 %v508_v14, %v502_v9  ;;  %v530_v25 = vadd.f32 %v529_v15, %v523_v10  ;;  %v456_v27 = vmax.f32 %v438_v17, 0.0  ;;  %v544_v28 = vadd.f32 %v543_v16, %v455_v0 }
 0x116   : > { %v441_v30 = vadd.f32 %v754_v38, %v440_v23  ;;  %v459_v43 = vmax.f32 %v449_v22, 0.0  ;;  %v506_v49 = vmul.f32 %v793_v21, %v458_v29  ;;  %v527_v50 = vmul.f32 %v809_v37, %v458_v29 }
 0x117   : > { %v504_v33 = vmul.f32 %v789_v2, %v456_v27  ;;  %v510_v34 = vadd.f32 %v509_v24, %v503_v19  ;;  %v525_v35 = vmul.f32 %v805_v13, %v456_v27  ;;  %v531_v36 = vadd.f32 %v530_v25, %v524_v20 }
 0x118   : > { %v545_v39 = vadd.f32 %v544_v28, %v456_v27  ;;  %v457_v40 = vmax.f32 %v441_v30, 0.0  ;;  %v507_v53 = vmul.f32 %v794_v44, %v459_v43  ;;  %v528_v54 = vmul.f32 %v810_v45, %v459_v43 }
 0x119   : > { %v511_v41 = vadd.f32 %v510_v34, %v504_v33  ;;  %v532_v42 = vadd.f32 %v531_v36, %v525_v35  ;;  %v576_v34 = vld [vmem:[%s575_s16] sm:$0x1] }
 0x11a   : > { %v505_v46 = vmul.f32 %v790_v31, %v457_v40  ;;  %v526_v47 = vmul.f32 %v806_v32, %v457_v40  ;;  %v546_v48 = vadd.f32 %v545_v39, %v457_v40  ;;  %v668_v31 = vlaneseq }
 0x11c   : > { %v512_v38 = vadd.f32 %v511_v41, %v505_v46  ;;  %v533_v51 = vadd.f32 %v532_v42, %v526_v47  ;;  %v547_v52 = vadd.f32 %v546_v48, %v458_v29  ;;  %v669_v32 = vand.u32 127, %v668_v31 }
 0x11e   : > { %v513_v55 = vadd.f32 %v512_v38, %v506_v49  ;;  %v534_v56 = vadd.f32 %v533_v51, %v527_v50  ;;  %v548_v57 = vadd.f32 %v547_v52, %v459_v43  ;;  %vm671_vm2 = vcmp.eq.s32.totalorder %v669_v32, 31 }
 0x11f   : > { %vm670_vm3 = vcmp.eq.s32.totalorder %v669_v32, 30 }
 0x120   : > { %v549_v58 = vrot.slane %v548_v57, 4  ;;  %v514_v59 = vadd.f32 %v513_v55, %v507_v53  ;;  %v535_v60 = vadd.f32 %v534_v56, %v528_v54 }
 0x122   : > { %v550_v61 = vadd.f32 %v549_v58, %v548_v57  ;;  %v515_v62 = vrot.slane %v514_v59, 4  ;;  %v536_v63 = vrot.slane %v535_v60, 4 }
 0x124   : > { %v551_v0 = vrot.slane %v550_v61, 2  ;;  %v516_v1 = vadd.f32 %v515_v62, %v514_v59  ;;  %v537_v2 = vadd.f32 %v536_v63, %v535_v60 }
 0x126   : > { %v552_v3 = vadd.f32 %v551_v0, %v550_v61  ;;  %v517_v4 = vrot.slane %v516_v1, 2  ;;  %v538_v5 = vrot.slane %v537_v2, 2 }
 0x128   : > { %v553_v6 = vrot.slane %v552_v3, 1  ;;  %v518_v7 = vadd.f32 %v517_v4, %v516_v1  ;;  %v539_v8 = vadd.f32 %v538_v5, %v537_v2 }
 0x12a   : > { %v554_v9 = vadd.f32 %v553_v6, %v552_v3  ;;  %v519_v10 = vrot.slane %v518_v7, 1  ;;  %v540_v11 = vrot.slane %v539_v8, 1 }
 0x12c   : > { %v555_v12 = vmul.f32 0.015625, %v554_v9  ;;  %v520_v13 = vadd.f32 %v519_v10, %v518_v7  ;;  %v541_v15 = vadd.f32 %v540_v11, %v539_v8 }
 0x12e   : > { %904 = vmatmul.mubr.f32.vlgmr.msra.gmra.mrb[0].mxu1 %v555_v12  ;;  %v648_v14 = vsel %vm647_vm1, %v520_v13, 0.0  ;;  %v658_v16 = vsel %vm647_vm1, %v541_v15, 0.0 }
 0x12f   : > { %649 = vadd.xlane.f32.xlu0 %v648_v14 }
 0x133   : > { %659 = vadd.xlane.f32.xlu0 %v658_v16 }
 0x1bc   : > { %v650_v17 = vpop.xlane.xlu0 %649 }
 0x1bd   : > { %v651_v18 = vrot.slane %v650_v17, 4 }
 0x1bf   : > { %v652_v19 = vadd.f32 %v651_v18, %v650_v17 }
 0x1c0   : > { %v660_v20 = vpop.xlane.xlu0 %659 }
 0x1c1   : > { %v653_v21 = vrot.slane %v652_v19, 2  ;;  %v661_v22 = vrot.slane %v660_v20, 4 }
 0x1c3   : > { %v662_v23 = vadd.f32 %v661_v22, %v660_v20  ;;  %v654_v24 = vadd.f32 %v653_v21, %v652_v19 }
 0x1c5   : > { %v663_v25 = vrot.slane %v662_v23, 2  ;;  %v655_v26 = vrot.slane %v654_v24, 1 }
 0x1c7   : > { %v664_v27 = vadd.f32 %v663_v25, %v662_v23  ;;  %v656_v28 = vadd.f32 %v655_v26, %v654_v24 }
 0x1c9   : > { %930 = vpush %v656_v28  ;;  %v665_v29 = vrot.slane %v664_v27, 1 }
 0x1cb   : > { %v666_v30 = vadd.f32 %v665_v29, %v664_v27 }
 0x1cd   : > { %932 = vpush %v666_v30 }
 0x1fa   : > { %s931_s17 = spop %930 }
 0x1fb   : > { %v674_v37 = vstv %s931_s17 }
 0x1fe   : > { %s933_s18 = spop %932 }
 0x1ff   : > { %v672_v33 = vstv %s933_s18 }
 0x200   : > { %v673_v35 = vsel %vm671_vm2, %v672_v33, 0.0 }
 0x201   : > { %v643_v36 = vpop.f32.mrb[0].mxu1  ;;  %v675_v41 = vsel %vm670_vm3, %v674_v37, %v673_v35 }
 0x202   : > { %v644_v39 = vadd.f32 %v643_v36, %v576_v34  ;;  %v905_v40 = vpop.f32.mrb[1].mxu1 }
 0x204   : > { %v676_v42 = vadd.f32 %v675_v41, %v644_v39 }
 0x206   : > { %677 = vst [vmem:[%s282_s21] sm:$0x1] %v676_v42 }
 0x207 PF: > { %s23_s8 = sadd.s32 1, %s1010_s8   ;;  %s1188_s29 = smov %s1006_s30 }
 0x208   : > { %p20_p10 = scmp.ge.s32.totalorder %s23_s8, 4   ;;  %s1189_s30 = smov %s1191_s0 }
 0x20a   :  { %22 = sbr.rel (!%p20_p10) target bundleno = 17 (0x11), region = 78 }

</bundles_post_ra>
